<compile_context>
chip_gen: v6e
topology: v6e:2x2x1
jax: 0.10.0
libtpu: 0.0.40
codegen_flags: <defaults>
</compile_context>

<pallas_src>
import functools
import math

import jax
import jax.numpy as jnp
from jax.experimental import pallas as pl
from jax.experimental.pallas import tpu as pltpu

VMEM_SPEC = pl.BlockSpec(memory_space=pltpu.MemorySpace.VMEM)
SMEM_SPEC = pl.BlockSpec(memory_space=pltpu.MemorySpace.SMEM)


def _round_up(x, m):
    return (x + m - 1) // m * m


# Per-generation tiling config: conservative (v7x-safe) defaults; bigger tiles + deeper
# VMEM budget on v5e/v6e which have 128 MiB VMEM and are more DMA-bound at 256 tiles.
_KIND = ""
try:
    _KIND = jax.devices()[0].device_kind.lower()
except Exception:  # pragma: no cover
    pass
_BIG_VMEM = ("v5" in _KIND) or ("v6" in _KIND)
_VMEM_LIMIT = (100 << 20) if _BIG_VMEM else (48 << 20)
_GEMM_TM = 512 if _BIG_VMEM else 256
_GEMM_TN = 512 if _BIG_VMEM else 256
_GEMM_TK = 1024 if _BIG_VMEM else 512
_VH_TB = 128 if _BIG_VMEM else 32      # keep >=2 batch steps for v7x's 2 TensorCores
_VH_TFL = 256 if _BIG_VMEM else 128


# ----------------------------- Pallas kernels ------------------------------ #

def _matmul_bias_kernel(x_ref, w_ref, b_ref, o_ref, acc_ref):
    """Tiled GEMM: o[i,j] = sum_k x[i,k] @ w[k,j] + b[j]. bf16 in, f32 accumulate."""
    @pl.when(pl.program_id(2) == 0)
    def _():
        acc_ref[...] = jnp.zeros_like(acc_ref)

    acc_ref[...] += jnp.dot(x_ref[...], w_ref[...],
                            preferred_element_type=jnp.float32)

    @pl.when(pl.program_id(2) == pl.num_programs(2) - 1)
    def _():
        o_ref[...] = (acc_ref[...] + b_ref[...].astype(jnp.float32)).astype(o_ref.dtype)


def pallas_linear(x, w_p, b_p, n_out, *, out_dtype=jnp.bfloat16,
                  tm=_GEMM_TM, tn=_GEMM_TN, tk=_GEMM_TK):
    """y = x @ w_p + b_p with grid/BlockSpec tiling, bf16 operands, f32 accumulation.

    `w_p` (Kp, Np) and `b_p` (1, Np) are pre-padded/pre-cast at init (Kp, Np multiples
    of 128).  Only the activation is (maybe) padded per call, via jnp.pad.
    """
    M, K = x.shape
    Kp, Np = w_p.shape

    Mp = _round_up(M, 16)                       # bf16 sublane alignment
    tm_ = min(tm, Mp)
    if Mp >= 32 and Mp // tm_ < 2:              # give both v7x TensorCores work
        tm_ = _round_up(max(Mp // 2, 16), 16)
    Mp = _round_up(Mp, tm_)
    tn_ = Np if Np <= tn else max(d for d in range(128, tn + 1, 128) if Np % d == 0)
    tk_ = Kp if Kp <= tk else max(d for d in range(128, tk + 1, 128) if Kp % d == 0)

    xp = x.astype(jnp.bfloat16)
    if (Mp, Kp) != (M, K):
        xp = jnp.pad(xp, ((0, Mp - M), (0, Kp - K)))

    grid = (Mp // tm_, Np // tn_, Kp // tk_)
    out = pl.pallas_call(
        _matmul_bias_kernel,
        out_shape=jax.ShapeDtypeStruct((Mp, Np), out_dtype),
        grid_spec=pltpu.PrefetchScalarGridSpec(
            num_scalar_prefetch=0,
            grid=grid,
            in_specs=[
                pl.BlockSpec((tm_, tk_), lambda i, j, k: (i, k)),
                pl.BlockSpec((tk_, tn_), lambda i, j, k: (k, j)),
                pl.BlockSpec((1, tn_), lambda i, j, k: (0, j)),
            ],
            out_specs=pl.BlockSpec((tm_, tn_), lambda i, j, k: (i, j)),
            scratch_shapes=[pltpu.VMEM((tm_, tn_), jnp.float32)],
        ),
        compiler_params=pltpu.CompilerParams(
            dimension_semantics=("parallel", "parallel", "arbitrary"),
            vmem_limit_bytes=_VMEM_LIMIT,
        ),
    )(xp, w_p, b_p)
    return out[:M, :n_out]


def _visual_head_kernel(x_ref, w_ref, b_ref, o_ref, acc_ref, *, inv_fl):
    """Fused patch/frame pooling (meanP) + visual projection, FL-tiled with f32 acc."""
    @pl.when(pl.program_id(1) == 0)
    def _():
        acc_ref[...] = jnp.zeros_like(acc_ref)

    # Sum over this frames*patches tile (mean's 1/FL is folded into the finalize).
    acc_ref[...] += jnp.sum(x_ref[...].astype(jnp.float32), axis=1)

    @pl.when(pl.program_id(1) == pl.num_programs(1) - 1)
    def _():
        pooled = (acc_ref[...] * inv_fl).astype(jnp.bfloat16)          # [tb, Dv]
        o_ref[...] = (jnp.dot(pooled, w_ref[...],
                              preferred_element_type=jnp.float32)
                      + b_ref[...])


def pallas_visual_head(feats, w_bf, b_f32, *, tb=_VH_TB, tfl=_VH_TFL):
    """feats: [bs_pair, frames*patches, Dv] (bf16) -> mean-pool -> project -> [bs_pair, E].

    The pooled intermediate never leaves VMEM; FL axis is tiled so the working set is
    size-independent of the frame/patch count.
    """
    B, FL, Dv = feats.shape
    E = w_bf.shape[1]
    inv_fl = 1.0 / float(FL)

    FLp = _round_up(FL, 16)
    tfl_ = min(tfl, FLp)
    FLp = _round_up(FLp, tfl_)
    tb_ = min(tb, B)
    Bp = _round_up(B, tb_)
    if (Bp, FLp) != (B, FL):
        feats = jnp.pad(feats, ((0, Bp - B), (0, FLp - FL), (0, 0)))   # zeros: sum-safe

    kernel = functools.partial(_visual_head_kernel, inv_fl=inv_fl)
    out = pl.pallas_call(
        kernel,
        out_shape=jax.ShapeDtypeStruct((Bp, E), jnp.float32),
        grid_spec=pltpu.PrefetchScalarGridSpec(
            num_scalar_prefetch=0,
            grid=(Bp // tb_, FLp // tfl_),
            in_specs=[
                pl.BlockSpec((tb_, tfl_, Dv), lambda i, j: (i, j, 0)),
                pl.BlockSpec((Dv, E), lambda i, j: (0, 0)),
                pl.BlockSpec((1, E), lambda i, j: (0, 0)),
            ],
            out_specs=pl.BlockSpec((tb_, E), lambda i, j: (i, 0)),
            scratch_shapes=[pltpu.VMEM((tb_, Dv), jnp.float32)],
        ),
        compiler_params=pltpu.CompilerParams(
            dimension_semantics=("parallel", "arbitrary"),
            vmem_limit_bytes=_VMEM_LIMIT,
        ),
    )(feats, w_bf, b_f32)
    return out[:B]


def _text_sim_loss_kernel(eot_ref, tw_ref, tb_ref, vis_ref, scale_ref, o_ref):
    """Fused: text projection, L2-normalize both towers, scaled similarity,
    CrossEn(sim) and CrossEn(sim.T) -> scalar loss.  Single N^2 exp, diag from features."""
    # Text projection (tiny GEMM, bf16 operands, f32 accumulation).
    seq = (jnp.dot(eot_ref[...].astype(jnp.bfloat16), tw_ref[...],
                   preferred_element_type=jnp.float32) + tb_ref[...])
    vis = vis_ref[...].astype(jnp.float32)

    seq_n = seq * jax.lax.rsqrt(jnp.sum(seq * seq, axis=-1, keepdims=True) + 1e-12)
    vis_n = vis * jax.lax.rsqrt(jnp.sum(vis * vis, axis=-1, keepdims=True) + 1e-12)

    scale = scale_ref[0]                                   # min(exp(logit_scale), 100), host-side
    sim = scale * jax.lax.dot_general(
        seq_n.astype(jnp.bfloat16), vis_n.astype(jnp.bfloat16),
        (((1,), (1,)), ((), ())), preferred_element_type=jnp.float32)
    n = sim.shape[0]

    # Row-wise (t2v) log-sum-exp; single full-matrix exp.
    m_row = jnp.max(sim, axis=-1, keepdims=True)                        # [n,1]
    p = jnp.exp(sim - m_row)                                            # the only N^2 exp
    lse_row = jnp.log(jnp.sum(p, axis=-1, keepdims=True)) + m_row

    # Column-wise (v2t) log-sum-exp from p with an N-length correction factor.
    # Global-max shift keeps every exp <= 1 (no overflow).
    m_all = jnp.max(m_row)
    w_row = jnp.exp(m_row - m_all)                                      # [n,1]
    lse_col = jnp.log(jnp.sum(p * w_row, axis=0, keepdims=True)) + m_all

    # Diagonal straight from the normalized features: O(N*E), no iota / masked N^2 sum.
    diag_sum = scale * jnp.sum(seq_n * vis_n)

    loss1 = jnp.mean(lse_row) - diag_sum / n                            # CrossEn(sim)
    loss2 = jnp.mean(lse_col) - diag_sum / n                            # CrossEn(sim.T)
    o_ref[...] = (0.5 * (loss1 + loss2)).reshape(1, 1)


def pallas_text_sim_loss(eot_feat, text_w_bf, text_b_f32, visual_output, scale):
    # TODO(synk): at large allgathered batch N, tile this kernel over query rows
    # (grid over N/tq with f32 row-LSE/diag scratch) so sim fits v7x's 64 MiB VMEM.
    out = pl.pallas_call(
        _text_sim_loss_kernel,
        out_shape=jax.ShapeDtypeStruct((1, 1), jnp.float32),
        in_specs=[VMEM_SPEC, VMEM_SPEC, VMEM_SPEC, VMEM_SPEC, SMEM_SPEC],
        out_specs=VMEM_SPEC,
    )(eot_feat, text_w_bf, text_b_f32, visual_output, scale)
    return out[0, 0]


# ----------------------------- Model wrapper ------------------------------- #

class CLIP4CLIPPallas:
    """Synthetic CLIP4CLIP (interaction='meanP', loose_type, training=True)."""

    def __init__(self, key, *, vocab_size=64, seq_len=8, max_frames=2,
                 channels=3, image_size=16, patch_size=8,
                 d_text=128, d_vis=128, embed_dim=128):
        self.patch_size = patch_size
        self.d_vis = d_vis
        self.embed_dim = embed_dim
        self.interaction = "meanP"
        self.training = True

        k = jax.random.split(key, 5)
        s = 0.02
        self.token_embedding = s * jax.random.normal(k[0], (vocab_size, d_text), jnp.float32)

        # --- weights pre-padded / pre-cast ONCE (no per-forward pad+cast HBM passes) ---
        text_w = s * jax.random.normal(k[1], (d_text, embed_dim), jnp.float32)
        self.text_proj_w_bf = text_w.astype(jnp.bfloat16)               # 128x128, aligned
        self.text_proj_b = jnp.zeros((1, embed_dim), jnp.float32)

        k_patch = channels * patch_size * patch_size
        kp = _round_up(k_patch, 128)
        dvp = _round_up(d_vis, 128)
        patch_w = s * jax.random.normal(k[2], (k_patch, d_vis), jnp.float32)
        self.patch_w_p = jnp.zeros((kp, dvp), jnp.bfloat16).at[:k_patch, :d_vis].set(
            patch_w.astype(jnp.bfloat16))
        self.patch_b_p = jnp.zeros((1, dvp), jnp.float32)

        vis_w = s * jax.random.normal(k[3], (d_vis, embed_dim), jnp.float32)
        self.vis_proj_w_bf = vis_w.astype(jnp.bfloat16)
        self.vis_proj_b = jnp.zeros((1, embed_dim), jnp.float32)

        self.logit_scale = jnp.full((1,), math.log(1.0 / 0.07), jnp.float32)

    # --- towers ---------------------------------------------------------- #
    def encode_text_pooled(self, input_ids):
        # TODO(synk): full EVA-CLIP text transformer (attention blocks) is not
        # reproduced; token-embedding + EOT-token pooling.  Projection is fused
        # into the loss kernel.
        # TODO(synk): attention_mask unused (CLIP uses EOT argmax pooling; padded ids
        # must be 0 for argmax to find the true EOT).
        emb = self.token_embedding[input_ids]                      # gather (glue)
        eot = jnp.argmax(input_ids, axis=-1)                       # CLIP EOT pooling
        return jnp.take_along_axis(emb, eot[:, None, None], axis=1)[:, 0, :]

    def encode_image_patches(self, video):
        # video: (B_frames, C, H, W) NCHW
        bf, c, h, w = video.shape
        p = self.patch_size
        # im2col (glue): NCHW -> (B_frames*patches, C*P*P); conv-as-matmul in Pallas.
        patches = video.reshape(bf, c, h // p, p, w // p, p)
        patches = patches.transpose(0, 2, 4, 1, 3, 5)
        patches = patches.reshape(bf * (h // p) * (w // p), c * p * p).astype(jnp.bfloat16)
        # Tiled, pipelined, bf16-in/bf16-out MXU matmul (dominant GEMM).
        feats = pallas_linear(patches, self.patch_w_p, self.patch_b_p, self.d_vis,
                              out_dtype=jnp.bfloat16)              # [BF*L, Dv] bf16
        return feats, (h // p) * (w // p)

    # --- forward ---------------------------------------------------------- #
    def forward(self, input_ids, token_type_ids, attention_mask, video, video_mask=None):
        input_ids = input_ids.reshape(-1, input_ids.shape[-1])
        token_type_ids = token_type_ids.reshape(-1, token_type_ids.shape[-1])
        attention_mask = attention_mask.reshape(-1, attention_mask.shape[-1])
        video_mask = video_mask.reshape(-1, video_mask.shape[-1])
        video = video.astype(jnp.float32)
        b, pair, bs, ts, channel, h, w = video.shape
        video = video.reshape(b * pair * bs * ts, channel, h, w)

        eot_feat = self.encode_text_pooled(input_ids)                  # [bs_pair, d_text]

        feats, num_patches = self.encode_image_patches(video)          # [BF*L, Dv] bf16
        bs_pair = b * pair
        feats = feats.reshape(bs_pair, bs * ts * num_patches, -1)
        # Fused: patch-mean + meanP frame-mean + visual projection.  Matches the
        # reference's unmasked visual_hidden.mean(1) (video_mask is not applied there).
        # TODO(synk): with real ViT blocks between patch embed and projection this
        # fusion must keep per-frame features separate.
        visual_output = pallas_visual_head(feats, self.vis_proj_w_bf, self.vis_proj_b)

        if self.training:
            # TODO(synk): allgather / torch.distributed.barrier are identity on one device.
            scale = jnp.minimum(jnp.exp(self.logit_scale), 100.0)      # host-side scalar
            # Fused text projection + normalize + logit_scale*S@V^T + CrossEn both ways.
            loss = pallas_text_sim_loss(eot_feat, self.text_proj_w_bf, self.text_proj_b,
                                        visual_output, scale)
            return loss
        return None


# --------------------------------- main ------------------------------------ #

if __name__ == "__main__":
    key = jax.random.PRNGKey(0)
    k_model, k_ids, k_video = jax.random.split(key, 3)

    b, pair, bs, ts = 2, 1, 1, 2          # batch=2, max_frames=2
    channels, hw = 3, 16
    seq_len, vocab = 8, 64

    model = CLIP4CLIPPallas(k_model, vocab_size=vocab, seq_len=seq_len,
                            max_frames=ts, channels=channels, image_size=hw,
                            patch_size=8, d_text=128, d_vis=128, embed_dim=128)

    input_ids = jax.random.randint(k_ids, (b, pair, seq_len), 1, vocab, dtype=jnp.int32)
    token_type_ids = jnp.zeros((b, pair, seq_len), jnp.int32)
    attention_mask = jnp.ones((b, pair, seq_len), jnp.int32)
    video = jax.random.normal(k_video, (b, pair, bs, ts, channels, hw, hw), jnp.float32)
    video_mask = jnp.ones((b, pair, bs * ts), jnp.int32)

    loss = model.forward(input_ids, token_type_ids, attention_mask, video, video_mask)
    loss = jax.block_until_ready(loss)
    assert jnp.isfinite(loss)
    print("KERNEL_OK")
</pallas_src>

<mosaic_0001>
module attributes {stable_mosaic.version = 11 : i64} {
  func.func @_matmul_bias_kernel(%arg0: i32, %arg1: i32, %arg2: i32, %arg3: memref<16x256xbf16, #tpu.memory_space<vmem>>, %arg4: memref<256x128xbf16, #tpu.memory_space<vmem>>, %arg5: memref<1x128xf32, #tpu.memory_space<vmem>>, %arg6: memref<16x128xbf16, #tpu.memory_space<vmem>>, %arg7: memref<16x128xf32, #tpu.memory_space<vmem>>) attributes {dimension_semantics = [#tpu.dimension_semantics<parallel>, #tpu.dimension_semantics<parallel>, #tpu.dimension_semantics<arbitrary>], iteration_bounds = array<i64: 1, 1, 1>, scalar_prefetch = 0 : i64, scratch_operands = 1 : i64, tpu.core_type = #tpu.core_type<tc>, window_params = [{transform_indices = @transform_0, window_bounds = array<i64: 16, 256>}, {transform_indices = @transform_1, window_bounds = array<i64: 256, 128>}, {transform_indices = @transform_2, window_bounds = array<i64: 1, 128>}, {transform_indices = @transform_3, window_bounds = array<i64: 16, 128>}]} {
    %c0_i32 = arith.constant 0 : i32
    %0 = arith.cmpi eq, %arg2, %c0_i32 : i32
    %1 = arith.extui %0 : i1 to i32
    %c0_i32_0 = arith.constant 0 : i32
    %2 = arith.cmpi ne, %1, %c0_i32_0 : i32
    scf.if %2 {
      %cst_10 = arith.constant 0.000000e+00 : f32
      %12 = vector.broadcast %cst_10 : f32 to vector<16x128xf32>
      %c0_11 = arith.constant 0 : index
      %c0_12 = arith.constant 0 : index
      %13 = vector.load %arg7[%c0_11, %c0_12] : memref<16x128xf32, #tpu.memory_space<vmem>>, vector<16x128xf32>
      tpu.vector_store %arg7[%c0_11, %c0_12], %12 {strides = array<i32>} : memref<16x128xf32, #tpu.memory_space<vmem>>, vector<16x128xf32>,
    } else {
    }
    %c0 = arith.constant 0 : index
    %c0_1 = arith.constant 0 : index
    %3 = vector.load %arg7[%c0, %c0_1] : memref<16x128xf32, #tpu.memory_space<vmem>>, vector<16x128xf32>
    %c0_2 = arith.constant 0 : index
    %c0_3 = arith.constant 0 : index
    %4 = vector.load %arg3[%c0_2, %c0_3] : memref<16x256xbf16, #tpu.memory_space<vmem>>, vector<16x256xbf16>
    %c0_4 = arith.constant 0 : index
    %c0_5 = arith.constant 0 : index
    %5 = vector.load %arg4[%c0_4, %c0_5] : memref<256x128xbf16, #tpu.memory_space<vmem>>, vector<256x128xbf16>
    %cst = arith.constant dense<0.000000e+00> : vector<16x128xf32>
    %6 = tpu.matmul %4, %5, %cst {dimension_numbers = #tpu.dot_dimension_numbers<[1], [0], [0], [1], [0, 0, 1, 1], [], []>} : vector<16x256xbf16>, vector<256x128xbf16>, vector<16x128xf32> -> vector<16x128xf32>
    %7 = arith.addf %3, %6 : vector<16x128xf32>
    %c0_6 = arith.constant 0 : index
    %c0_7 = arith.constant 0 : index
    %8 = vector.load %arg7[%c0_6, %c0_7] : memref<16x128xf32, #tpu.memory_space<vmem>>, vector<16x128xf32>
    tpu.vector_store %arg7[%c0_6, %c0_7], %7 {strides = array<i32>} : memref<16x128xf32, #tpu.memory_space<vmem>>, vector<16x128xf32>,
    %c0_i32_8 = arith.constant 0 : i32
    %9 = arith.cmpi eq, %arg2, %c0_i32_8 : i32
    %10 = arith.extui %9 : i1 to i32
    %c0_i32_9 = arith.constant 0 : i32
    %11 = arith.cmpi ne, %10, %c0_i32_9 : i32
    scf.if %11 {
      %c0_10 = arith.constant 0 : index
      %c0_11 = arith.constant 0 : index
      %12 = vector.load %arg7[%c0_10, %c0_11] : memref<16x128xf32, #tpu.memory_space<vmem>>, vector<16x128xf32>
      %c0_12 = arith.constant 0 : index
      %c0_13 = arith.constant 0 : index
      %13 = vector.load %arg5[%c0_12, %c0_13] : memref<1x128xf32, #tpu.memory_space<vmem>>, vector<1x128xf32>
      %14 = vector.broadcast %13 : vector<1x128xf32> to vector<16x128xf32>
      %15 = arith.addf %12, %14 : vector<16x128xf32>
      %16 = arith.truncf %15 : vector<16x128xf32> to vector<16x128xbf16>
      %c0_14 = arith.constant 0 : index
      %c0_15 = arith.constant 0 : index
      %17 = vector.load %arg6[%c0_14, %c0_15] : memref<16x128xbf16, #tpu.memory_space<vmem>>, vector<16x128xbf16>
      tpu.vector_store %arg6[%c0_14, %c0_15], %16 {strides = array<i32>} : memref<16x128xbf16, #tpu.memory_space<vmem>>, vector<16x128xbf16>,
    } else {
    }
    return
  }
  func.func @transform_0(%arg0: i32, %arg1: i32, %arg2: i32) -> (i32, i32) {
    %c0_i32 = arith.constant 0 : i32
    return %arg0, %arg2 : i32, i32
  }
  func.func @transform_1(%arg0: i32, %arg1: i32, %arg2: i32) -> (i32, i32) {
    %c0_i32 = arith.constant 0 : i32
    return %arg2, %arg1 : i32, i32
  }
  func.func @transform_2(%arg0: i32, %arg1: i32, %arg2: i32) -> (i32, i32) {
    %c0_i32 = arith.constant 0 : i32
    %c0_i32_0 = arith.constant 0 : i32
    return %c0_i32, %arg1 : i32, i32
  }
  func.func @transform_3(%arg0: i32, %arg1: i32, %arg2: i32) -> (i32, i32) {
    %c0_i32 = arith.constant 0 : i32
    return %arg0, %arg1 : i32, i32
  }
}

</mosaic_0001>

<bundles_post_ra>
// kernel: tpu_custom_call.1
= control target key start
LH: loop header
LB: loop body
LE: loop exit
PB: predicated region body
PF: predicated region fallthrough
CT: control target
= control target key end

     0   :  { %8 = vsyncpa [#allocation4], 0  ;;  %s466_s0 = inlined_call_operand.hbm [shape: bf16[16,256], index: 0, kind: input, shape index: {}]   ;;  %s467_s1 = inlined_call_operand.hbm [shape: bf16[256,128], index: 1, kind: input, shape index: {}]   ;;  %s468_s2 = inlined_call_operand.vmem [shape: f32[1,128], index: 2, kind: input, shape index: {}]   ;;  %s469_s3 = inlined_call_operand.hbm [shape: bf16[16,128], index: 3, kind: output, shape index: {}]  }
   0x1   :  { %9 = vsyncpa [#allocation7], 0 }
   0x2   :  { %10 = vsyncpa [#allocation5], 0  ;;  %s421_s12 = smov [#allocation3]  }
   0x3   :  { %s16_s13 = sshll.u32 %s421_s12, 4  ;;  %s17_s13 = int_to_ptr.vmem [resolvable:$true] %s16_s13 }
   0x4   :  { %s363_s14 = scalar_lea.vmem %s17_s13, 256  ;;  %p368_p1 = scmp.lt.s32.totalorder %s17_s13, %s17_s13 }
   0x5   :  { %p364_p0 = scmp.ne.s32.totalorder %s17_s13, %s363_s14  ;;  %p369_p2 = scmp.lt.s32.totalorder %s363_s14, %s363_s14 }
   0x7   :  { %p370_p3 = por %p369_p2, %p368_p1 }
   0x9   :  { %p371_p4 = pnand %p370_p3, %p364_p0 }
   0xb   :  { %374 = shalt.err (!%p371_p4)
}
   0xc   :  { %s422_s15 = smov 128   ;;  %s423_s16 = smov 8  }
   0xd   :  { %22 = dma.hbm_to_vmem [thread:$0]  %s466_s0, 256, %s17_s13, [#allocation4], %s422_s15, %s422_s15, %s423_s16  }
   0xe   :  { %s424_s19 = smov [#allocation6]  }
   0xf   :  { %s28_s20 = sshll.u32 %s424_s19, 4  ;;  %s29_s20 = int_to_ptr.vmem [resolvable:$true] %s28_s20 }
  0x10   :  { %s383_s21 = scalar_lea.vmem %s29_s20, 2048  ;;  %p388_p6 = scmp.lt.s32.totalorder %s29_s20, %s29_s20 }
  0x11   :  { %p384_p5 = scmp.ne.s32.totalorder %s29_s20, %s383_s21  ;;  %p389_p7 = scmp.lt.s32.totalorder %s383_s21, %s383_s21 }
  0x13   :  { %p390_p8 = por %p389_p7, %p388_p6 }
  0x15   :  { %p391_p9 = pnand %p390_p8, %p384_p5 }
  0x17   :  { %394 = shalt.err (!%p391_p9)
}
  0x18   :  { %s425_s22 = smov 64   ;;  %s426_s23 = smov 4  }
  0x19   :  { %34 = dma.hbm_to_vmem [thread:$0]  %s467_s1, 2048, %s29_s20, [#allocation7], %s425_s22, %s425_s22, %s426_s23  }
  0x1a   :  { %415 = dma.done.wait [#allocation4], 256  }
  0x1b   :  { %416 = vsyncadd [#allocation4], 4294967040 }
  0x1c   :  { %417 = dma.done.wait [#allocation7], 2048  }
  0x1d   :  { %418 = vsyncadd [#allocation7], 4294965248  ;;  %v336_v0 = vld [vmem:[#allocation6 + $0x78] sm:$0xff]   ;;  %v338_v2 = vld [vmem:[#allocation6 + $0x70] sm:$0xff]   ;;  %s427_s26 = smov [#allocation8]  }
  0x1e   :  { %v337_v1 = vld [vmem:[#allocation6 + $0x38] sm:$0xff]   ;;  %307 = vmatprep.subr.bf16.mxu0 %v336_v0  ;;  %v339_v3 = vld [vmem:[#allocation6 + $0x30] sm:$0xff]   ;;  %v340_v4 = vld [vmem:[#allocation6 + $0x68] sm:$0xff]   ;;  %s266_s27 = sshll.u32 %s427_s26, 4  ;;  %s267_s27 = int_to_ptr.vmem [resolvable:$true] %s266_s27 }
  0x1f   :  { %308 = vmatpush3.bf16.msra.mxu0 %v337_v1  ;;  %v341_v5 = vld [vmem:[#allocation6 + $0x28] sm:$0xff]   ;;  %v342_v6 = vld [vmem:[#allocation6 + $0x60] sm:$0xff]   ;;  %v344_v8 = vld [vmem:[#allocation6 + $0x58] sm:$0xff]   ;;  %s395_s28 = scalar_lea.vmem %s267_s27, 128  ;;  %p400_p11 = scmp.lt.s32.totalorder %s267_s27, %s267_s27 }
  0x20   :  { %309 = vmatprep.subr.bf16.mxu0 %v338_v2  ;;  %v343_v7 = vld [vmem:[#allocation6 + $0x20] sm:$0xff]   ;;  %v345_v9 = vld [vmem:[#allocation6 + $0x18] sm:$0xff]   ;;  %v346_v10 = vld [vmem:[#allocation6 + $0x50] sm:$0xff]   ;;  %p396_p10 = scmp.ne.s32.totalorder %s267_s27, %s395_s28  ;;  %p401_p12 = scmp.lt.s32.totalorder %s395_s28, %s395_s28 }
  0x21   :  { %v354_v11 = vld [vmem:[#allocation3 + $0x4] ss:$8 sps:$4 sm:$0xff]   ;;  %v348_v13 = vld [vmem:[#allocation6 + $0x48] sm:$0xff]   ;;  %v350_v15 = vld [vmem:[#allocation6 + $0x40] sm:$0xff]  }
  0x22   :  { %v347_v12 = vld [vmem:[#allocation6 + $0x10] sm:$0xff]   ;;  %224 = vmatprep.mubr.bf16.mxu0 %v354_v11  ;;  %v349_v14 = vld [vmem:[#allocation6 + $0x8] sm:$0xff]   ;;  %v351_v16 = vld [vmem:[#allocation6] sm:$0xff]   ;;  %p402_p13 = por %p401_p12, %p400_p11 }
  0x23   :  { %310 = vmatpush3.bf16.msra.mxu0 %v339_v3  ;;  %v352_v17 = vld [vmem:[#allocation3] ss:$8 sps:$4 sm:$0xff]  }
  0x24   :  { %311 = vmatprep.subr.bf16.mxu0 %v340_v4  ;;  %v297_v22 = vld [vmem:[%s468_s2] ss:$0 sm:$0xff]  ;;  %p403_p0 = pnand %p402_p13, %p396_p10 }
  0x27   :  { %312 = vmatpush3.bf16.msra.mxu0 %v341_v5 }
  0x28   :  { %313 = vmatprep.subr.bf16.mxu0 %v342_v6 }
  0x2b   :  { %314 = vmatpush3.bf16.msra.mxu0 %v343_v7 }
  0x2c   :  { %315 = vmatprep.subr.bf16.mxu0 %v344_v8 }
  0x2f   :  { %316 = vmatpush3.bf16.msra.mxu0 %v345_v9 }
  0x30   :  { %317 = vmatprep.subr.bf16.mxu0 %v346_v10 }
  0x33   :  { %318 = vmatpush3.bf16.msra.mxu0 %v347_v12 }
  0x34   :  { %319 = vmatprep.subr.bf16.mxu0 %v348_v13 }
  0x37   :  { %320 = vmatpush3.bf16.msra.mxu0 %v349_v14 }
  0x38   :  { %321 = vmatprep.subr.bf16.mxu0 %v350_v15 }
  0x3b   :  { %322 = vmatpush3.bf16.msra.mxu0 %v351_v16 }
  0x3e   :  { %225 = vmatmul.mubr.bf16.vlgmr.msra.gmra.mxu0 %v352_v17 }
  0xfe   :  { %v323_v18 = vpop.f32.mrf.mxu0 }
 0x100   :  { %v324_v19 = vpop.f32.mrf.mxu0 }
 0x101   :  { %v325_v21 = vadd.f32 %v324_v19, %v323_v18 }
 0x102   :  { %v326_v20 = vpop.f32.mrf.mxu0 }
 0x103   :  { %v249_v25 = vadd.f32 %v325_v21, %v297_v22 }
 0x104   :  { %v327_v23 = vpop.f32.mrf.mxu0 }
 0x105   :  { %v328_v24 = vadd.f32 %v327_v23, %v326_v20 }
 0x107   :  { %v250_v26 = vadd.f32 %v328_v24, %v297_v22 }
 0x109   :  { %v305_v27 = vpack.c.bf16 %v250_v26, %v249_v25 }
 0x10b   :  { %306 = vst [vmem:[#allocation8] sm:$0xff] %v305_v27  }
 0x10c   :  { %406 = shalt.err (!%p403_p0)
}
 0x10d   :  { %272 = dma.vmem_to_hbm [thread:$0]  %s267_s27, 128, %s469_s3, [#allocation5], %s425_s22, %s425_s22, %s426_s23  }
 0x10e   :  { %419 = dma.done.wait [#allocation5], 128  }
 0x10f   :  { %420 = vsyncadd [#allocation5], 4294967168 }
 0x110   :  { %276 = vsyncpa [#allocation4], 1 }
 0x111   :  { %277 = vsyncpa [#allocation7], 1 }
 0x112   :  { %278 = vsyncpa [#allocation5], 1 }

</bundles_post_ra>
